<compile_context>
chip_gen: v7x
topology: tpu7x:2x2x1
jax: 0.10.0
libtpu: 0.0.40
codegen_flags: <defaults>
</compile_context>

<pallas_src>
import functools

import jax
import jax.numpy as jnp
from jax.experimental import pallas as pl
from jax.experimental.pallas import tpu as pltpu


def _linear_softmax(acc, w_ref, b_ref, out_ref, out_dim):
    """acc: (tile_b, E) f32 summed embeddings -> out_ref[...] softmax probs."""
    # NOTE: for large E / O, cast `acc` and the weights to bf16 here (keep
    # preferred_element_type=f32) and pad K/M toward the MXU tile; at the
    # current (8, 32) x (32, 128) f32 shape the matmul is negligible.
    logits = jnp.dot(acc, w_ref[...], preferred_element_type=jnp.float32)
    logits = logits + b_ref[...]
    # Mask zero-padded output lanes so the softmax only covers real classes.
    lane = jax.lax.broadcasted_iota(jnp.int32, logits.shape, 1)
    logits = jnp.where(lane < out_dim, logits, -1e30)
    m = jnp.max(logits, axis=-1, keepdims=True)
    e = jnp.exp(logits - m)
    # Exact division (not pl.reciprocal(approx=True)) so rows sum to 1; it runs
    # once over tile_b x O_pad elements, essentially free.
    out_ref[...] = e / jnp.sum(e, axis=-1, keepdims=True)


def _kernel_table_in_vmem(idx_ref, emb_ref, w_ref, b_ref, out_ref, acc_ref, *,
                          seq_len, out_dim, batch, tile_b):
    """Small-vocab path: whole (V, E) table resident in VMEM, in-VMEM gather.

    idx_ref: (B_pad*S,) int32 in SMEM (scalar prefetch)
    emb_ref: (V, E)     stored dtype, resident
    w_ref:   (E, O_pad) f32, resident
    b_ref:   (1, O_pad) f32, resident
    out_ref: (tile_b, O_pad) f32, this tile's output block
    acc_ref: (tile_b, E) f32 VMEM scratch
    """
    t = pl.program_id(0)
    emb_dim = emb_ref.shape[1]

    acc_ref[...] = jnp.zeros_like(acc_ref)

    for r in range(tile_b):                      # static unroll over sublanes
        @pl.when(t * tile_b + r < batch)         # skip padded batch rows
        def _(r=r):
            base = (t * tile_b + r) * seq_len

            def body(s, carry):
                tok = idx_ref[base + s]
                row = emb_ref[pl.ds(tok, 1), :].astype(jnp.float32)  # (1, E)
                return carry + row

            total = jax.lax.fori_loop(
                0, seq_len, body, jnp.zeros((1, emb_dim), jnp.float32))
            acc_ref[pl.ds(r, 1), :] = total      # single static-row store

    _linear_softmax(acc_ref[...], w_ref, b_ref, out_ref, out_dim)


def _kernel_table_in_hbm(idx_ref, emb_hbm, w_ref, b_ref, out_ref,
                         acc_ref, buf_ref, sem_ref, *,
                         seq_len, out_dim, batch, tile_b):
    """Large-vocab path: table stays in HBM; manual double-buffered row gather.

    emb_hbm: (V, E) raw HBM ref (memory_space=pl.ANY)
    buf_ref: (2, 1, E) VMEM double buffer in the table's stored dtype
    sem_ref: (2,) DMA semaphores
    """
    t = pl.program_id(0)
    emb_dim = buf_ref.shape[-1]

    acc_ref[...] = jnp.zeros_like(acc_ref)

    for r in range(tile_b):                      # static unroll over sublanes
        @pl.when(t * tile_b + r < batch)         # no DMAs for padded rows
        def _(r=r):
            base = (t * tile_b + r) * seq_len

            def start(s, slot):
                tok = idx_ref[base + s]
                pltpu.make_async_copy(emb_hbm.at[pl.ds(tok, 1), :],
                                      buf_ref.at[slot],
                                      sem_ref.at[slot]).start()

            start(0, 0)                          # prime the pipeline

            def body(s, carry):
                slot = jax.lax.rem(s, 2)
                pltpu.make_async_copy(emb_hbm.at[pl.ds(0, 1), :],
                                      buf_ref.at[slot],
                                      sem_ref.at[slot]).wait()

                @pl.when(s + 1 < seq_len)        # prefetch next token's row
                def _():
                    start(s + 1, 1 - slot)

                return carry + buf_ref[slot].astype(jnp.float32)  # (1, E)

            total = jax.lax.fori_loop(
                0, seq_len, body, jnp.zeros((1, emb_dim), jnp.float32))
            acc_ref[pl.ds(r, 1), :] = total

    _linear_softmax(acc_ref[...], w_ref, b_ref, out_ref, out_dim)


def embedding_classifier(x, emb_table, fc_weight, fc_bias, *,
                         table_vmem_budget_bytes=4 * 1024 * 1024):
    """x: (B, S) int token ids; emb_table: (V, E); fc_weight: (O, E) torch-style;
    fc_bias: (O,).  Returns (B, O) softmax probabilities (f32)."""
    B, S = x.shape
    V, E = emb_table.shape
    O = fc_weight.shape[0]

    TILE_B = 8                                   # sublane-aligned batch tile
    B_pad = ((B + TILE_B - 1) // TILE_B) * TILE_B
    B_tiles = B_pad // TILE_B
    O_pad = ((O + 127) // 128) * 128             # lane-dense output stores

    # Glue in plain JAX: transpose fc weight to (E, O) and zero-pad out-features
    # up to O_pad; pad the bias the same way.  (Weight/bias are f32 already.)
    w_t = jnp.zeros((E, O_pad), jnp.float32).at[:, :O].set(
        fc_weight.T.astype(jnp.float32))
    b2 = jnp.zeros((1, O_pad), jnp.float32).at[:, :O].set(
        fc_bias.astype(jnp.float32).reshape(1, O))

    # Token ids, padded batch rows filled with 0 (never read: kernel gates them).
    idx = jnp.zeros((B_pad, S), jnp.int32).at[:B, :].set(
        x.astype(jnp.int32)).reshape(B_pad * S)

    itemsize = emb_table.dtype.itemsize
    small_table = V * E * itemsize <= table_vmem_budget_bytes
    # NOTE(v7x): VMEM is 64 MiB (vs 128 MiB on v5e/v6e); the 4 MiB default
    # budget for a resident table plus the small resident (E, O_pad) weight is
    # comfortably inside the 32 MiB scoped default on all generations.  If
    # E*O_pad*4 grows large, tile O with a second grid axis.

    if small_table:
        kernel = functools.partial(_kernel_table_in_vmem, seq_len=S,
                                   out_dim=O, batch=B, tile_b=TILE_B)
        in_specs = [
            # Whole table DMA'd once (native dtype, no wrapper astype).
            pl.BlockSpec((V, E), lambda t, idx_ref: (0, 0)),
            pl.BlockSpec((E, O_pad), lambda t, idx_ref: (0, 0)),
            pl.BlockSpec((1, O_pad), lambda t, idx_ref: (0, 0)),
        ]
        scratch_shapes = [pltpu.VMEM((TILE_B, E), jnp.float32)]
        table_bytes = V * E * itemsize
    else:
        kernel = functools.partial(_kernel_table_in_hbm, seq_len=S,
                                   out_dim=O, batch=B, tile_b=TILE_B)
        in_specs = [
            pl.BlockSpec(memory_space=pl.ANY),   # table stays in HBM
            pl.BlockSpec((E, O_pad), lambda t, idx_ref: (0, 0)),
            pl.BlockSpec((1, O_pad), lambda t, idx_ref: (0, 0)),
        ]
        scratch_shapes = [
            pltpu.VMEM((TILE_B, E), jnp.float32),        # f32 accumulator
            pltpu.VMEM((2, 1, E), emb_table.dtype),       # gather double buffer
            pltpu.SemaphoreType.DMA((2,)),
        ]
        table_bytes = B * S * E * itemsize       # only needed rows are gathered

    cost = pl.CostEstimate(
        flops=int(2 * B_pad * E * O_pad + B_pad * S * E),
        transcendentals=int(B_pad * O_pad),
        bytes_accessed=int(table_bytes + E * O_pad * 4 + O_pad * 4
                           + B_pad * O_pad * 4 + B_pad * S * 4),
    )

    out_padded = pl.pallas_call(
        kernel,
        out_shape=jax.ShapeDtypeStruct((B_pad, O_pad), jnp.float32),
        grid_spec=pltpu.PrefetchScalarGridSpec(
            num_scalar_prefetch=1,               # token ids -> SMEM
            grid=(B_tiles,),
            in_specs=in_specs,
            out_specs=pl.BlockSpec((TILE_B, O_pad), lambda t, idx_ref: (t, 0)),
            scratch_shapes=scratch_shapes,
        ),
        compiler_params=pltpu.CompilerParams(
            # Each batch tile is independent (init + finalize are per-tile),
            # so the axis is parallel -> v7x megacore shards it; harmless on
            # single-TC v5e/v6e.
            dimension_semantics=("parallel",),
        ),
        cost_estimate=cost,
    )(idx, emb_table, w_t, b2)

    return out_padded[:B, :O]


if __name__ == "__main__":
    key = jax.random.PRNGKey(0)
    k_emb, k_idx, k_w, k_b = jax.random.split(key, 4)

    # Small shapes consistent with the module's forward.
    batch, seq = 2, 8
    vocab, emb_dim, out_dim = 64, 32, 8

    # Deterministic "pretrained" embeddings + fc params (synthetic, in-script).
    pretrained_embeddings = jax.random.normal(k_emb, (vocab, emb_dim),
                                              dtype=jnp.float32)
    fc_weight = jax.random.normal(k_w, (out_dim, emb_dim), dtype=jnp.float32) * 0.1
    fc_bias = jax.random.normal(k_b, (out_dim,), dtype=jnp.float32) * 0.1

    # Integer token indices (B, S).
    x = jax.random.randint(k_idx, (batch, seq), 0, vocab, dtype=jnp.int32)

    # Pure-JAX reference (same semantics as the PyTorch forward).
    ref_emb = pretrained_embeddings[x]                             # (B, S, E)
    ref_sum = ref_emb.sum(axis=1)                                  # (B, E)
    ref_logits = jnp.dot(ref_sum, fc_weight.T,
                         precision=jax.lax.Precision.HIGHEST) + fc_bias
    ref = jax.nn.softmax(ref_logits, axis=-1)

    # Path A: small-table fast path (whole table resident in VMEM).
    out_a = jax.block_until_ready(
        embedding_classifier(x, pretrained_embeddings, fc_weight, fc_bias))
    assert jnp.allclose(out_a, ref, atol=2e-3, rtol=2e-3), (out_a, ref)
    assert jnp.allclose(out_a.sum(axis=-1), 1.0, atol=1e-5)  # exact softmax

    # Path B: large-vocab path (HBM table + double-buffered DMA row gather),
    # forced here by setting the VMEM budget to 0 so both paths are exercised.
    out_b = jax.block_until_ready(
        embedding_classifier(x, pretrained_embeddings, fc_weight, fc_bias,
                             table_vmem_budget_bytes=0))
    assert jnp.allclose(out_b, ref, atol=2e-3, rtol=2e-3), (out_b, ref)
    assert jnp.allclose(out_b.sum(axis=-1), 1.0, atol=1e-5)

    print("KERNEL_OK")
</pallas_src>

<mosaic_0001>
module attributes {stable_mosaic.version = 11 : i64} {
  func.func @_kernel_table_in_vmem(%arg0: i32, %arg1: memref<64xi32, #tpu.memory_space<smem>>, %arg2: memref<64x32xf32, #tpu.memory_space<vmem>>, %arg3: memref<32x128xf32, #tpu.memory_space<vmem>>, %arg4: memref<1x128xf32, #tpu.memory_space<vmem>>, %arg5: memref<8x128xf32, #tpu.memory_space<vmem>>, %arg6: memref<8x32xf32, #tpu.memory_space<vmem>>) attributes {dimension_semantics = [#tpu.dimension_semantics<parallel>], iteration_bounds = array<i64: 1>, scalar_prefetch = 1 : i64, scratch_operands = 1 : i64, tpu.core_type = #tpu.core_type<tc>, window_params = [{pipeline_mode = #tpu.pipeline_mode<synchronous>, transform_indices = @transform_0, window_bounds = array<i64: 64, 32>}, {pipeline_mode = #tpu.pipeline_mode<synchronous>, transform_indices = @transform_1, window_bounds = array<i64: 32, 128>}, {pipeline_mode = #tpu.pipeline_mode<synchronous>, transform_indices = @transform_2, window_bounds = array<i64: 1, 128>}, {transform_indices = @transform_3, window_bounds = array<i64: 8, 128>}]} {
    %cst = arith.constant 0.000000e+00 : f32
    %0 = vector.broadcast %cst : f32 to vector<8x32xf32>
    %c0 = arith.constant 0 : index
    %c0_0 = arith.constant 0 : index
    %1 = vector.load %arg6[%c0, %c0_0] : memref<8x32xf32, #tpu.memory_space<vmem>>, vector<8x32xf32>
    tpu.vector_store %arg6[%c0, %c0_0], %0 {strides = array<i32>} : memref<8x32xf32, #tpu.memory_space<vmem>>, vector<8x32xf32>,
    %c8_i32 = arith.constant 8 : i32
    %2 = arith.muli %arg0, %c8_i32 : i32
    %c0_i32 = arith.constant 0 : i32
    %3 = arith.addi %2, %c0_i32 : i32
    %c2_i32 = arith.constant 2 : i32
    %4 = arith.cmpi slt, %3, %c2_i32 : i32
    %5 = arith.extui %4 : i1 to i32
    %c0_i32_1 = arith.constant 0 : i32
    %6 = arith.cmpi ne, %5, %c0_i32_1 : i32
    scf.if %6 {
      %c8_i32_37 = arith.constant 8 : i32
      %63 = arith.muli %arg0, %c8_i32_37 : i32
      %c0_i32_38 = arith.constant 0 : i32
      %64 = arith.addi %63, %c0_i32_38 : i32
      %c8_i32_39 = arith.constant 8 : i32
      %65 = arith.muli %64, %c8_i32_39 : i32
      %cst_40 = arith.constant 0.000000e+00 : f32
      %66 = vector.broadcast %cst_40 : f32 to vector<1x32xf32>
      %c0_i32_41 = arith.constant 0 : i32
      %c8_i32_42 = arith.constant 8 : i32
      %67 = arith.addi %c0_i32_41, %c8_i32_42 : i32
      %c1_i32_43 = arith.constant 1 : i32
      %68 = scf.for %arg7 = %c0_i32_41 to %67 step %c1_i32_43 iter_args(%arg8 = %66) -> (vector<1x32xf32>)  : i32 {
        %70 = arith.addi %65, %arg7 : i32
        %71 = arith.index_cast %70 : i32 to index
        %72 = memref.load %arg1[%71] : memref<64xi32, #tpu.memory_space<smem>>
        %73 = arith.index_cast %72 : i32 to index
        %c0_47 = arith.constant 0 : index
        %74 = vector.load %arg2[%73, %c0_47] : memref<64x32xf32, #tpu.memory_space<vmem>>, vector<1x32xf32>
        %75 = arith.addf %arg8, %74 : vector<1x32xf32>
        scf.yield %75 : vector<1x32xf32>
      }
      %c8_i32_44 = arith.constant 8 : i32
      %c0_45 = arith.constant 0 : index
      %c0_46 = arith.constant 0 : index
      %69 = vector.load %arg6[%c0_45, %c0_46] : memref<8x32xf32, #tpu.memory_space<vmem>>, vector<1x32xf32>
      tpu.vector_store %arg6[%c0_45, %c0_46], %68 {strides = array<i32>} : memref<8x32xf32, #tpu.memory_space<vmem>>, vector<1x32xf32>,
    } else {
    }
    %c8_i32_2 = arith.constant 8 : i32
    %7 = arith.muli %arg0, %c8_i32_2 : i32
    %c1_i32 = arith.constant 1 : i32
    %8 = arith.addi %7, %c1_i32 : i32
    %c2_i32_3 = arith.constant 2 : i32
    %9 = arith.cmpi slt, %8, %c2_i32_3 : i32
    %10 = arith.extui %9 : i1 to i32
    %c0_i32_4 = arith.constant 0 : i32
    %11 = arith.cmpi ne, %10, %c0_i32_4 : i32
    scf.if %11 {
      %c8_i32_37 = arith.constant 8 : i32
      %63 = arith.muli %arg0, %c8_i32_37 : i32
      %c1_i32_38 = arith.constant 1 : i32
      %64 = arith.addi %63, %c1_i32_38 : i32
      %c8_i32_39 = arith.constant 8 : i32
      %65 = arith.muli %64, %c8_i32_39 : i32
      %cst_40 = arith.constant 0.000000e+00 : f32
      %66 = vector.broadcast %cst_40 : f32 to vector<1x32xf32>
      %c0_i32_41 = arith.constant 0 : i32
      %c8_i32_42 = arith.constant 8 : i32
      %67 = arith.addi %c0_i32_41, %c8_i32_42 : i32
      %c1_i32_43 = arith.constant 1 : i32
      %68 = scf.for %arg7 = %c0_i32_41 to %67 step %c1_i32_43 iter_args(%arg8 = %66) -> (vector<1x32xf32>)  : i32 {
        %70 = arith.addi %65, %arg7 : i32
        %71 = arith.index_cast %70 : i32 to index
        %72 = memref.load %arg1[%71] : memref<64xi32, #tpu.memory_space<smem>>
        %73 = arith.index_cast %72 : i32 to index
        %c0_46 = arith.constant 0 : index
        %74 = vector.load %arg2[%73, %c0_46] : memref<64x32xf32, #tpu.memory_space<vmem>>, vector<1x32xf32>
        %75 = arith.addf %arg8, %74 : vector<1x32xf32>
        scf.yield %75 : vector<1x32xf32>
      }
      %c8_i32_44 = arith.constant 8 : i32
      %c1 = arith.constant 1 : index
      %c0_45 = arith.constant 0 : index
      %69 = vector.load %arg6[%c1, %c0_45] : memref<8x32xf32, #tpu.memory_space<vmem>>, vector<1x32xf32>
      tpu.vector_store %arg6[%c1, %c0_45], %68 {strides = array<i32>} : memref<8x32xf32, #tpu.memory_space<vmem>>, vector<1x32xf32>,
    } else {
    }
    %c8_i32_5 = arith.constant 8 : i32
    %12 = arith.muli %arg0, %c8_i32_5 : i32
    %c2_i32_6 = arith.constant 2 : i32
    %13 = arith.addi %12, %c2_i32_6 : i32
    %c2_i32_7 = arith.constant 2 : i32
    %14 = arith.cmpi slt, %13, %c2_i32_7 : i32
    %15 = arith.extui %14 : i1 to i32
    %c0_i32_8 = arith.constant 0 : i32
    %16 = arith.cmpi ne, %15, %c0_i32_8 : i32
    scf.if %16 {
      %c8_i32_37 = arith.constant 8 : i32
      %63 = arith.muli %arg0, %c8_i32_37 : i32
      %c2_i32_38 = arith.constant 2 : i32
      %64 = arith.addi %63, %c2_i32_38 : i32
      %c8_i32_39 = arith.constant 8 : i32
      %65 = arith.muli %64, %c8_i32_39 : i32
      %cst_40 = arith.constant 0.000000e+00 : f32
      %66 = vector.broadcast %cst_40 : f32 to vector<1x32xf32>
      %c0_i32_41 = arith.constant 0 : i32
      %c8_i32_42 = arith.constant 8 : i32
      %67 = arith.addi %c0_i32_41, %c8_i32_42 : i32
      %c1_i32_43 = arith.constant 1 : i32
      %68 = scf.for %arg7 = %c0_i32_41 to %67 step %c1_i32_43 iter_args(%arg8 = %66) -> (vector<1x32xf32>)  : i32 {
        %70 = arith.addi %65, %arg7 : i32
        %71 = arith.index_cast %70 : i32 to index
        %72 = memref.load %arg1[%71] : memref<64xi32, #tpu.memory_space<smem>>
        %73 = arith.index_cast %72 : i32 to index
        %c0_46 = arith.constant 0 : index
        %74 = vector.load %arg2[%73, %c0_46] : memref<64x32xf32, #tpu.memory_space<vmem>>, vector<1x32xf32>
        %75 = arith.addf %arg8, %74 : vector<1x32xf32>
        scf.yield %75 : vector<1x32xf32>
      }
      %c8_i32_44 = arith.constant 8 : i32
      %c2 = arith.constant 2 : index
      %c0_45 = arith.constant 0 : index
      %69 = vector.load %arg6[%c2, %c0_45] : memref<8x32xf32, #tpu.memory_space<vmem>>, vector<1x32xf32>
      tpu.vector_store %arg6[%c2, %c0_45], %68 {strides = array<i32>} : memref<8x32xf32, #tpu.memory_space<vmem>>, vector<1x32xf32>,
    } else {
    }
    %c8_i32_9 = arith.constant 8 : i32
    %17 = arith.muli %arg0, %c8_i32_9 : i32
    %c3_i32 = arith.constant 3 : i32
    %18 = arith.addi %17, %c3_i32 : i32
    %c2_i32_10 = arith.constant 2 : i32
    %19 = arith.cmpi slt, %18, %c2_i32_10 : i32
    %20 = arith.extui %19 : i1 to i32
    %c0_i32_11 = arith.constant 0 : i32
    %21 = arith.cmpi ne, %20, %c0_i32_11 : i32
    scf.if %21 {
      %c8_i32_37 = arith.constant 8 : i32
      %63 = arith.muli %arg0, %c8_i32_37 : i32
      %c3_i32_38 = arith.constant 3 : i32
      %64 = arith.addi %63, %c3_i32_38 : i32
      %c8_i32_39 = arith.constant 8 : i32
      %65 = arith.muli %64, %c8_i32_39 : i32
      %cst_40 = arith.constant 0.000000e+00 : f32
      %66 = vector.broadcast %cst_40 : f32 to vector<1x32xf32>
      %c0_i32_41 = arith.constant 0 : i32
      %c8_i32_42 = arith.constant 8 : i32
      %67 = arith.addi %c0_i32_41, %c8_i32_42 : i32
      %c1_i32_43 = arith.constant 1 : i32
      %68 = scf.for %arg7 = %c0_i32_41 to %67 step %c1_i32_43 iter_args(%arg8 = %66) -> (vector<1x32xf32>)  : i32 {
        %70 = arith.addi %65, %arg7 : i32
        %71 = arith.index_cast %70 : i32 to index
        %72 = memref.load %arg1[%71] : memref<64xi32, #tpu.memory_space<smem>>
        %73 = arith.index_cast %72 : i32 to index
        %c0_46 = arith.constant 0 : index
        %74 = vector.load %arg2[%73, %c0_46] : memref<64x32xf32, #tpu.memory_space<vmem>>, vector<1x32xf32>
        %75 = arith.addf %arg8, %74 : vector<1x32xf32>
        scf.yield %75 : vector<1x32xf32>
      }
      %c8_i32_44 = arith.constant 8 : i32
      %c3 = arith.constant 3 : index
      %c0_45 = arith.constant 0 : index
      %69 = vector.load %arg6[%c3, %c0_45] : memref<8x32xf32, #tpu.memory_space<vmem>>, vector<1x32xf32>
      tpu.vector_store %arg6[%c3, %c0_45], %68 {strides = array<i32>} : memref<8x32xf32, #tpu.memory_space<vmem>>, vector<1x32xf32>,
    } else {
    }
    %c8_i32_12 = arith.constant 8 : i32
    %22 = arith.muli %arg0, %c8_i32_12 : i32
    %c4_i32 = arith.constant 4 : i32
    %23 = arith.addi %22, %c4_i32 : i32
    %c2_i32_13 = arith.constant 2 : i32
    %24 = arith.cmpi slt, %23, %c2_i32_13 : i32
    %25 = arith.extui %24 : i1 to i32
    %c0_i32_14 = arith.constant 0 : i32
    %26 = arith.cmpi ne, %25, %c0_i32_14 : i32
    scf.if %26 {
      %c8_i32_37 = arith.constant 8 : i32
      %63 = arith.muli %arg0, %c8_i32_37 : i32
      %c4_i32_38 = arith.constant 4 : i32
      %64 = arith.addi %63, %c4_i32_38 : i32
      %c8_i32_39 = arith.constant 8 : i32
      %65 = arith.muli %64, %c8_i32_39 : i32
      %cst_40 = arith.constant 0.000000e+00 : f32
      %66 = vector.broadcast %cst_40 : f32 to vector<1x32xf32>
      %c0_i32_41 = arith.constant 0 : i32
      %c8_i32_42 = arith.constant 8 : i32
      %67 = arith.addi %c0_i32_41, %c8_i32_42 : i32
      %c1_i32_43 = arith.constant 1 : i32
      %68 = scf.for %arg7 = %c0_i32_41 to %67 step %c1_i32_43 iter_args(%arg8 = %66) -> (vector<1x32xf32>)  : i32 {
        %70 = arith.addi %65, %arg7 : i32
        %71 = arith.index_cast %70 : i32 to index
        %72 = memref.load %arg1[%71] : memref<64xi32, #tpu.memory_space<smem>>
        %73 = arith.index_cast %72 : i32 to index
        %c0_46 = arith.constant 0 : index
        %74 = vector.load %arg2[%73, %c0_46] : memref<64x32xf32, #tpu.memory_space<vmem>>, vector<1x32xf32>
        %75 = arith.addf %arg8, %74 : vector<1x32xf32>
        scf.yield %75 : vector<1x32xf32>
      }
      %c8_i32_44 = arith.constant 8 : i32
      %c4 = arith.constant 4 : index
      %c0_45 = arith.constant 0 : index
      %69 = vector.load %arg6[%c4, %c0_45] : memref<8x32xf32, #tpu.memory_space<vmem>>, vector<1x32xf32>
      tpu.vector_store %arg6[%c4, %c0_45], %68 {strides = array<i32>} : memref<8x32xf32, #tpu.memory_space<vmem>>, vector<1x32xf32>,
    } else {
    }
    %c8_i32_15 = arith.constant 8 : i32
    %27 = arith.muli %arg0, %c8_i32_15 : i32
    %c5_i32 = arith.constant 5 : i32
    %28 = arith.addi %27, %c5_i32 : i32
    %c2_i32_16 = arith.constant 2 : i32
    %29 = arith.cmpi slt, %28, %c2_i32_16 : i32
    %30 = arith.extui %29 : i1 to i32
    %c0_i32_17 = arith.constant 0 : i32
    %31 = arith.cmpi ne, %30, %c0_i32_17 : i32
    scf.if %31 {
      %c8_i32_37 = arith.constant 8 : i32
      %63 = arith.muli %arg0, %c8_i32_37 : i32
      %c5_i32_38 = arith.constant 5 : i32
      %64 = arith.addi %63, %c5_i32_38 : i32
      %c8_i32_39 = arith.constant 8 : i32
      %65 = arith.muli %64, %c8_i32_39 : i32
      %cst_40 = arith.constant 0.000000e+00 : f32
      %66 = vector.broadcast %cst_40 : f32 to vector<1x32xf32>
      %c0_i32_41 = arith.constant 0 : i32
      %c8_i32_42 = arith.constant 8 : i32
      %67 = arith.addi %c0_i32_41, %c8_i32_42 : i32
      %c1_i32_43 = arith.constant 1 : i32
      %68 = scf.for %arg7 = %c0_i32_41 to %67 step %c1_i32_43 iter_args(%arg8 = %66) -> (vector<1x32xf32>)  : i32 {
        %70 = arith.addi %65, %arg7 : i32
        %71 = arith.index_cast %70 : i32 to index
        %72 = memref.load %arg1[%71] : memref<64xi32, #tpu.memory_space<smem>>
        %73 = arith.index_cast %72 : i32 to index
        %c0_46 = arith.constant 0 : index
        %74 = vector.load %arg2[%73, %c0_46] : memref<64x32xf32, #tpu.memory_space<vmem>>, vector<1x32xf32>
        %75 = arith.addf %arg8, %74 : vector<1x32xf32>
        scf.yield %75 : vector<1x32xf32>
      }
      %c8_i32_44 = arith.constant 8 : i32
      %c5 = arith.constant 5 : index
      %c0_45 = arith.constant 0 : index
      %69 = vector.load %arg6[%c5, %c0_45] : memref<8x32xf32, #tpu.memory_space<vmem>>, vector<1x32xf32>
      tpu.vector_store %arg6[%c5, %c0_45], %68 {strides = array<i32>} : memref<8x32xf32, #tpu.memory_space<vmem>>, vector<1x32xf32>,
    } else {
    }
    %c8_i32_18 = arith.constant 8 : i32
    %32 = arith.muli %arg0, %c8_i32_18 : i32
    %c6_i32 = arith.constant 6 : i32
    %33 = arith.addi %32, %c6_i32 : i32
    %c2_i32_19 = arith.constant 2 : i32
    %34 = arith.cmpi slt, %33, %c2_i32_19 : i32
    %35 = arith.extui %34 : i1 to i32
    %c0_i32_20 = arith.constant 0 : i32
    %36 = arith.cmpi ne, %35, %c0_i32_20 : i32
    scf.if %36 {
      %c8_i32_37 = arith.constant 8 : i32
      %63 = arith.muli %arg0, %c8_i32_37 : i32
      %c6_i32_38 = arith.constant 6 : i32
      %64 = arith.addi %63, %c6_i32_38 : i32
      %c8_i32_39 = arith.constant 8 : i32
      %65 = arith.muli %64, %c8_i32_39 : i32
      %cst_40 = arith.constant 0.000000e+00 : f32
      %66 = vector.broadcast %cst_40 : f32 to vector<1x32xf32>
      %c0_i32_41 = arith.constant 0 : i32
      %c8_i32_42 = arith.constant 8 : i32
      %67 = arith.addi %c0_i32_41, %c8_i32_42 : i32
      %c1_i32_43 = arith.constant 1 : i32
      %68 = scf.for %arg7 = %c0_i32_41 to %67 step %c1_i32_43 iter_args(%arg8 = %66) -> (vector<1x32xf32>)  : i32 {
        %70 = arith.addi %65, %arg7 : i32
        %71 = arith.index_cast %70 : i32 to index
        %72 = memref.load %arg1[%71] : memref<64xi32, #tpu.memory_space<smem>>
        %73 = arith.index_cast %72 : i32 to index
        %c0_46 = arith.constant 0 : index
        %74 = vector.load %arg2[%73, %c0_46] : memref<64x32xf32, #tpu.memory_space<vmem>>, vector<1x32xf32>
        %75 = arith.addf %arg8, %74 : vector<1x32xf32>
        scf.yield %75 : vector<1x32xf32>
      }
      %c8_i32_44 = arith.constant 8 : i32
      %c6 = arith.constant 6 : index
      %c0_45 = arith.constant 0 : index
      %69 = vector.load %arg6[%c6, %c0_45] : memref<8x32xf32, #tpu.memory_space<vmem>>, vector<1x32xf32>
      tpu.vector_store %arg6[%c6, %c0_45], %68 {strides = array<i32>} : memref<8x32xf32, #tpu.memory_space<vmem>>, vector<1x32xf32>,
    } else {
    }
    %c8_i32_21 = arith.constant 8 : i32
    %37 = arith.muli %arg0, %c8_i32_21 : i32
    %c7_i32 = arith.constant 7 : i32
    %38 = arith.addi %37, %c7_i32 : i32
    %c2_i32_22 = arith.constant 2 : i32
    %39 = arith.cmpi slt, %38, %c2_i32_22 : i32
    %40 = arith.extui %39 : i1 to i32
    %c0_i32_23 = arith.constant 0 : i32
    %41 = arith.cmpi ne, %40, %c0_i32_23 : i32
    scf.if %41 {
      %c8_i32_37 = arith.constant 8 : i32
      %63 = arith.muli %arg0, %c8_i32_37 : i32
      %c7_i32_38 = arith.constant 7 : i32
      %64 = arith.addi %63, %c7_i32_38 : i32
      %c8_i32_39 = arith.constant 8 : i32
      %65 = arith.muli %64, %c8_i32_39 : i32
      %cst_40 = arith.constant 0.000000e+00 : f32
      %66 = vector.broadcast %cst_40 : f32 to vector<1x32xf32>
      %c0_i32_41 = arith.constant 0 : i32
      %c8_i32_42 = arith.constant 8 : i32
      %67 = arith.addi %c0_i32_41, %c8_i32_42 : i32
      %c1_i32_43 = arith.constant 1 : i32
      %68 = scf.for %arg7 = %c0_i32_41 to %67 step %c1_i32_43 iter_args(%arg8 = %66) -> (vector<1x32xf32>)  : i32 {
        %70 = arith.addi %65, %arg7 : i32
        %71 = arith.index_cast %70 : i32 to index
        %72 = memref.load %arg1[%71] : memref<64xi32, #tpu.memory_space<smem>>
        %73 = arith.index_cast %72 : i32 to index
        %c0_46 = arith.constant 0 : index
        %74 = vector.load %arg2[%73, %c0_46] : memref<64x32xf32, #tpu.memory_space<vmem>>, vector<1x32xf32>
        %75 = arith.addf %arg8, %74 : vector<1x32xf32>
        scf.yield %75 : vector<1x32xf32>
      }
      %c8_i32_44 = arith.constant 8 : i32
      %c7 = arith.constant 7 : index
      %c0_45 = arith.constant 0 : index
      %69 = vector.load %arg6[%c7, %c0_45] : memref<8x32xf32, #tpu.memory_space<vmem>>, vector<1x32xf32>
      tpu.vector_store %arg6[%c7, %c0_45], %68 {strides = array<i32>} : memref<8x32xf32, #tpu.memory_space<vmem>>, vector<1x32xf32>,
    } else {
    }
    %c0_24 = arith.constant 0 : index
    %c0_25 = arith.constant 0 : index
    %42 = vector.load %arg6[%c0_24, %c0_25] : memref<8x32xf32, #tpu.memory_space<vmem>>, vector<8x32xf32>
    %c0_26 = arith.constant 0 : index
    %c0_27 = arith.constant 0 : index
    %43 = vector.load %arg3[%c0_26, %c0_27] : memref<32x128xf32, #tpu.memory_space<vmem>>, vector<32x128xf32>
    %cst_28 = arith.constant dense<0.000000e+00> : vector<8x128xf32>
    %44 = tpu.matmul %42, %43, %cst_28 {dimension_numbers = #tpu.dot_dimension_numbers<[1], [0], [0], [1], [0, 0, 1, 1], [], []>} : vector<8x32xf32>, vector<32x128xf32>, vector<8x128xf32> -> vector<8x128xf32>
    %c0_29 = arith.constant 0 : index
    %c0_30 = arith.constant 0 : index
    %45 = vector.load %arg4[%c0_29, %c0_30] : memref<1x128xf32, #tpu.memory_space<vmem>>, vector<1x128xf32>
    %46 = vector.broadcast %45 : vector<1x128xf32> to vector<8x128xf32>
    %47 = arith.addf %44, %46 : vector<8x128xf32>
    %48 = tpu.iota {dimensions = array<i32: 1>} : vector<8x128xi32>
    %c8_i32_31 = arith.constant 8 : i32
    %49 = vector.broadcast %c8_i32_31 : i32 to vector<8x128xi32>
    %50 = arith.cmpi slt, %48, %49 : vector<8x128xi32>
    %cst_32 = arith.constant -1.000000e+30 : f32
    %51 = vector.broadcast %cst_32 : f32 to vector<8x128xf32>
    %52 = arith.select %50, %47, %51 : vector<8x128xi1>, vector<8x128xf32>
    %cst_33 = arith.constant dense<0xFF800000> : vector<8xf32>
    %53 = vector.multi_reduction <maximumf>, %52, %cst_33 [1] : vector<8x128xf32> to vector<8xf32>
    %54 = vector.shape_cast %53 : vector<8xf32> to vector<8x1xf32>
    %55 = vector.broadcast %54 : vector<8x1xf32> to vector<8x128xf32>
    %56 = arith.subf %52, %55 : vector<8x128xf32>
    %57 = math.exp %56 : vector<8x128xf32>
    %cst_34 = arith.constant dense<0.000000e+00> : vector<8xf32>
    %58 = vector.multi_reduction <add>, %57, %cst_34 [1] : vector<8x128xf32> to vector<8xf32>
    %59 = vector.shape_cast %58 : vector<8xf32> to vector<8x1xf32>
    %60 = vector.broadcast %59 : vector<8x1xf32> to vector<8x128xf32>
    %61 = arith.divf %57, %60 : vector<8x128xf32>
    %c0_35 = arith.constant 0 : index
    %c0_36 = arith.constant 0 : index
    %62 = vector.load %arg5[%c0_35, %c0_36] : memref<8x128xf32, #tpu.memory_space<vmem>>, vector<8x128xf32>
    tpu.vector_store %arg5[%c0_35, %c0_36], %61 {strides = array<i32>} : memref<8x128xf32, #tpu.memory_space<vmem>>, vector<8x128xf32>,
    return
  }
  func.func @transform_0(%arg0: i32, %arg1: memref<64xi32, #tpu.memory_space<smem>>) -> (i32, i32) {
    %c0_i32 = arith.constant 0 : i32
    %c0_i32_0 = arith.constant 0 : i32
    %c0_i32_1 = arith.constant 0 : i32
    return %c0_i32, %c0_i32_0 : i32, i32
  }
  func.func @transform_1(%arg0: i32, %arg1: memref<64xi32, #tpu.memory_space<smem>>) -> (i32, i32) {
    %c0_i32 = arith.constant 0 : i32
    %c0_i32_0 = arith.constant 0 : i32
    %c0_i32_1 = arith.constant 0 : i32
    return %c0_i32, %c0_i32_0 : i32, i32
  }
  func.func @transform_2(%arg0: i32, %arg1: memref<64xi32, #tpu.memory_space<smem>>) -> (i32, i32) {
    %c0_i32 = arith.constant 0 : i32
    %c0_i32_0 = arith.constant 0 : i32
    %c0_i32_1 = arith.constant 0 : i32
    return %c0_i32, %c0_i32_0 : i32, i32
  }
  func.func @transform_3(%arg0: i32, %arg1: memref<64xi32, #tpu.memory_space<smem>>) -> (i32, i32) {
    %c0_i32 = arith.constant 0 : i32
    %c0_i32_0 = arith.constant 0 : i32
    return %arg0, %c0_i32 : i32, i32
  }
}

</mosaic_0001>

<bundles_post_ra>
// kernel: tpu_custom_call.1
= control target key start
LH: loop header
LB: loop body
LE: loop exit
PB: predicated region body
PF: predicated region fallthrough
CT: control target
= control target key end

     0   :  { %s574_s0 = inlined_call_operand.vmem [shape: s32[64], index: 0, kind: input, shape index: {}]   ;;  %s575_s1 = inlined_call_operand.vmem [shape: f32[64,32], index: 1, kind: input, shape index: {}]   ;;  %s576_s2 = inlined_call_operand.vmem [shape: f32[32,128], index: 2, kind: input, shape index: {}]   ;;  %s577_s3 = inlined_call_operand.vmem [shape: f32[1,128], index: 3, kind: input, shape index: {}]   ;;  %s578_s4 = inlined_call_operand.hbm [shape: f32[8,128], index: 4, kind: output, shape index: {}]  }
   0x1   :  { %s9_s17 = sshll.u32 %s574_s0, 4  ;;  %s10_s17 = int_to_ptr.vmem [resolvable:$true] %s9_s17 }
   0x2   :  { %s434_s18 = scalar_lea.vmem %s10_s17, 16  ;;  %p439_p1 = scmp.lt.s32.totalorder %s10_s17, %s10_s17 }
   0x3   :  { %p435_p0 = scmp.ne.s32.totalorder %s10_s17, %s434_s18  ;;  %p440_p2 = scmp.lt.s32.totalorder %s434_s18, %s434_s18 }
   0x5   :  { %p441_p3 = por %p440_p2, %p439_p1 }
   0x7   :  { %p442_p4 = pnand %p441_p3, %p435_p0 }
   0x9   :  { %445 = shalt.err (!%p442_p4)  }
   0xa   :  { %s504_s19 = smov [#allocation4]  }
   0xb   :  { %12 = dma.vmem_to_smem %s10_s17, 16, %s504_s19, [#allocation3] }
   0xc   :  { %484 = dma.done.wait [#allocation3], 16 }
   0xd   :  { %485 = vsyncadd [#allocation3], 4294967280 }
   0xe   :  { %14 = sfence }
   0xf   :  { %15 = vsyncpa [#allocation6], 0  ;;  %vm22_vm0 = vcmask 261120   ;;  %v505_v0 = vmov 0.0   ;;  %v488_v1 = vmov 0.0   ;;  %s492_s0 = smov 0  }
  0x10   :  { %23 = vst.msk [vmem:[#allocation2] sm:$0xff] %vm22_vm0, %v505_v0 }
  0x11 LB: > { %s38_s20 = sld [smem:[#allocation4 + %s494_s0]]  ;;  %s35_s0 = sadd.s32 1, %s494_s0   ;;  %s494_s0 = sphi %s492_s0, %s35_s0   ;;  %v490_v1 = vphi %v488_v1, %v489_v1  }
  0x12   : > { %p32_p5 = scmp.ge.s32.totalorder %s35_s0, 8  }
  0x13   :  { %vm42_vm1 = vcmask (%p32_p5), 253952   ;;  %v496_v4 = vmov (%p32_p5), 0.0   ;;  %s500_s24 = smov (%p32_p5), 0  }
  0x15   :  { %34 = sbr.rel (!%p32_p5) target bundleno = 17 (0x11), region = 128 }
  0x17   : > { %s39_s23 = scalar_lea.vmem %s575_s1, %s38_s20 }
  0x18   : > { %v40_v2 = vld [vmem:[%s39_s23] sm:$0x1] }
  0x19   : > { %v41_v3 = vadd.f32 %v490_v1, %v40_v2  }
  0x1b   : > { %v489_v1 = vmov %v41_v3   ;;  %43 = vst.msk [vmem:[#allocation2] sm:$0x1] (%p32_p5), %vm42_vm1, %v41_v3 }
  0x1c LB: > { %s57_s25 = sadd.s32 8, %s502_s24  ;;  %s55_s24 = sadd.s32 1, %s502_s24   ;;  %s502_s24 = sphi %s500_s24, %s55_s24   ;;  %v498_v4 = vphi %v496_v4, %v497_v4  }
  0x1d   : > { %s58_s26 = sld [smem:[#allocation4 + %s57_s25]]  ;;  %p52_p6 = scmp.ge.s32.totalorder %s55_s24, 8  }
  0x1e   :  { %v185_v7 = vld [vmem:[%s576_s2] sm:$0xff] (%p52_p6)  ;;  %v186_v8 = vld [vmem:[%s576_s2 + $0x8] sm:$0xff] (%p52_p6)  ;;  %v187_v9 = vld [vmem:[%s576_s2 + $0x10] sm:$0xff] (%p52_p6)  ;;  %v506_v10 = vmov (%p52_p6), 0.0|0.0   ;;  %vm507_vm2 = vmmov (%p52_p6), 0   ;;  %v269_v15 = vlaneseq (%p52_p6) }
  0x1f   :  { %387 = vmatprep.subr.bf16.mxu0 (%p52_p6), %v506_v10  ;;  %v388_v11 = vpack.c.bf16 (%p52_p6), %v186_v8, %v185_v7  ;;  %v188_v12 = vld [vmem:[%s576_s2 + $0x18] sm:$0xff] (%p52_p6)  ;;  %384 = vmatprep.mubr.msk.f32.mxu0 (%p52_p6), %vm507_vm2, %v505_v0  ;;  %v369_v17 = vld [vmem:[%s577_s3] ss:$0 sm:$0xff] (%p52_p6)  ;;  %s508_s2 = smov (%p52_p6), [#allocation5]  }
  0x20   :  { %v391_v13 = vpack.c.bf16 (%p52_p6), %v188_v12, %v187_v9  ;;  %v270_v16 = vand.u32 (%p52_p6), 127, %v269_v15  ;;  %s289_s13 = sshll.u32 (%p52_p6), %s508_s2, 4  ;;  %s290_s13 = int_to_ptr.vmem [resolvable:$true] %s289_s13 }
  0x21   :  { %54 = sbr.rel (!%p52_p6) target bundleno = 28 (0x1c), region = 139  ;;  %389 = vmatpush3.bf16.msra.mxu0 (%p52_p6), %v388_v11  ;;  %s446_s3 = scalar_lea.vmem (%p52_p6), %s290_s13, 128 }
  0x22   :  { %390 = vmatprep.subr.bf16.mxu0 (%p52_p6), %v506_v10  ;;  %vm271_vm3 = vcmp.lt.s32.totalorder (%p52_p6), %v270_v16, 8  ;;  %p447_p7 = scmp.ne.s32.totalorder (%p52_p6), %s290_s13, %s446_s3  ;;  %p451_p8 = scmp.lt.s32.totalorder (%p52_p6), %s290_s13, %s290_s13 }
  0x23   : > { %s59_s29 = scalar_lea.vmem %s575_s1, %s58_s26  ;;  %p452_p9 = scmp.lt.s32.totalorder (%p52_p6), %s446_s3, %s446_s3 }
  0x24   : > { %v60_v5 = vld [vmem:[%s59_s29] sm:$0x1] }
  0x25   : > { %v61_v6 = vadd.f32 %v498_v4, %v60_v5   ;;  %392 = vmatpush3.bf16.msra.mxu0 (%p52_p6), %v391_v13  ;;  %p453_p10 = por (%p52_p6), %p452_p9, %p451_p8 }
  0x27   : > { %v497_v4 = vmov %v61_v6   ;;  %63 = vst.msk [vmem:[#allocation2 + $0x1] sm:$0x1] (%p52_p6), %vm42_vm1, %v61_v6  ;;  %p454_p11 = pnand (%p52_p6), %p453_p10, %p447_p7 }
  0x2e   :  { %v184_v14 = vld [vmem:[#allocation2] sm:$0xff] }
  0x2f   :  { %385 = vmatmul.mubr.msk.f32.vlgmr.msra.gmra.mrb[0].mxu0 %vm22_vm0, %v184_v14 }
 0x102   :  { %v265_v18 = vpop.f32.mrb[0].mxu0 }
 0x103   :  { %v266_v19 = vadd.f32 %v369_v17, %v265_v18  ;;  %v386_v20 = vpop.f32.mrb[1].mxu0 }
 0x105   :  { %v272_v21 = vsel %vm271_vm3, %v266_v19, -1e+30 }
 0x106   :  { %273 = vmax.xlane.f32.xlu0 %v272_v21 }
 0x193   :  { %v274_v22 = vpop.xlane.xlu0 %273 }
 0x194   :  { %v275_v23 = vsub.f32 %v272_v21, %v274_v22 }
 0x196   :  { %v276_v24 = vmul.f32 1.442695, %v275_v23 }
 0x198   :  { %430 = vpow2.f32 %v276_v24 }
 0x1a2   :  { %v431_v25 = vpop.eup %430 }
 0x1a3   :  { %278 = vadd.xlane.f32.xlu0 %v431_v25 }
 0x230   :  { %v279_v26 = vpop.xlane.xlu0 %278 }
 0x231   :  { %432 = vrcp.f32 %v279_v26 }
 0x23b   :  { %v433_v27 = vpop.eup %432 }
 0x23c   :  { %v281_v28 = vmul.f32 %v433_v27, %v431_v25 }
 0x23e   :  { %282 = vst [vmem:[#allocation5] sm:$0xff] %v281_v28 }
 0x23f   :  { %457 = shalt.err (!%p454_p11)
}
 0x240   :  { %s458_s16 = scalar_lea.hbm %s578_s4, 128 }
 0x241   :  { %p459_p12 = scmp.ne.s32.totalorder %s578_s4, %s458_s16  ;;  %p462_p13 = scmp.lt.u32.totalorder %s458_s16, %s578_s4 }
 0x243   :  { %p464_p0 = pnand %p462_p13, %p459_p12 }
 0x245   :  { %467 = shalt.err (!%p464_p0)
}
 0x246   :  { %292 = dma.vmem_to_hbm [thread:$0]  %s290_s13, 128, %s578_s4, [#allocation6]  }
 0x247   :  { %486 = dma.done.wait [#allocation6], 128  }
 0x248   :  { %487 = vsyncadd [#allocation6], 4294967168 }
 0x249   :  { %296 = vsyncpa [#allocation6], 1 }

</bundles_post_ra>
